<compile_context>
chip_gen: v7x
topology: tpu7x:2x2x1
jax: 0.10.0
libtpu: 0.0.40
codegen_flags: <defaults>
</compile_context>

<pallas_src>
import jax
import jax.numpy as jnp
from jax.experimental import pallas as pl
from jax.experimental.pallas import tpu as pltpu


_VMEM_BUDGET = 28 * 1024 * 1024       # conservative: safe on v7x (64 MiB physical)
_VMEM_LIMIT_CAP = 48 * 1024 * 1024


def _round_up(x, m):
    return ((x + m - 1) // m) * m


# ------------------------------ kernels -------------------------------------

def _matmul_bias_fullk_kernel(x_ref, w_ref, b_ref, o_ref):
    """Single-shot GEMM: the W tile is resident along the whole (padded) K axis."""
    acc = jax.lax.dot_general(
        x_ref[...], w_ref[...],
        dimension_numbers=(((1,), (0,)), ((), ())),   # (M,K) x (K,N)
        preferred_element_type=jnp.float32,
    )
    o_ref[...] = (acc + b_ref[...]).astype(o_ref.dtype)


def _matmul_bias_ktiled_kernel(x_ref, w_ref, b_ref, o_ref, acc_ref):
    """K-tiled fallback (very large C_in*kernel_size); bias folded into acc init."""
    k = pl.program_id(2)

    @pl.when(k == 0)
    def _():
        acc_ref[...] = pl.broadcast_to(b_ref[...], acc_ref.shape)

    acc_ref[...] += jax.lax.dot_general(
        x_ref[...], w_ref[...],
        dimension_numbers=(((1,), (0,)), ((), ())),
        preferred_element_type=jnp.float32,
    )

    @pl.when(k == pl.num_programs(2) - 1)
    def _():
        o_ref[...] = acc_ref[...].astype(o_ref.dtype)


# ------------------------------ wrapper -------------------------------------

def conv1d_norm_pallas(x, weight, bias=None, *, stride=1, padding=None, dilation=1,
                       tm=512, tn=512, tk_max=2048, compute_dtype=jnp.bfloat16,
                       force_ktiled=False):
    """Conv1d forward matching torch.nn.Conv1d semantics.

    x:      [N, C_in, L]
    weight: [C_out, C_in, kernel_size]
    bias:   [C_out] or None
    returns [N, C_out, L_out] in x's original dtype.
    compute_dtype: GEMM input dtype (default bf16 for MXU peak); accumulation f32.
    """
    N, C_in, L = x.shape
    C_out, C_in_w, KW = weight.shape
    assert C_in_w == C_in, "weight in_channels mismatch"
    if padding is None:
        assert KW % 2 == 1, "odd kernel_size required when padding is None"
        padding = dilation * (KW - 1) // 2
    L_out = (L + 2 * padding - dilation * (KW - 1) - 1) // stride + 1

    out_dtype = x.dtype
    if compute_dtype is not None:
        # Cast early: halves HBM bytes of the im2col plumbing and of X_col itself.
        x = x.astype(compute_dtype)
        weight = weight.astype(compute_dtype)
    in_b = jnp.dtype(x.dtype).itemsize
    out_b = jnp.dtype(out_dtype).itemsize

    # ---- im2col: layout plumbing in the wrapper (all FLOPs stay in the kernel) ----
    xcl = jnp.transpose(x, (0, 2, 1))                                   # [N, L, C_in]
    xcl = jnp.pad(xcl, ((0, 0), (padding, padding), (0, 0)))
    taps = [
        xcl[:, k * dilation: k * dilation + (L_out - 1) * stride + 1: stride, :]
        for k in range(KW)
    ]                                                                   # KW x [N, L_out, C_in]
    patches = jnp.stack(taps, axis=-1)                                  # [N, L_out, C_in, KW]

    M = N * L_out
    Kc = C_in * KW
    x_col = patches.reshape(M, Kc)                                      # col index = ci*KW + k
    w2 = jnp.transpose(weight.reshape(C_out, Kc), (1, 0))               # [Kc, C_out]
    if bias is None:
        bias = jnp.zeros((C_out,), jnp.float32)

    # ---- tile selection: aligned, clamped, VMEM-budgeted ----
    m_align = 16 if in_b == 2 else 8                                    # bf16 sublane packing
    M_a = _round_up(M, m_align)
    N_a = _round_up(C_out, 128)
    tm = min(tm, M_a)
    tn = min(tn, N_a)
    # v7x megacore: guarantee >=2 blocks along the parallel axes when possible.
    if pl.cdiv(M_a, tm) * pl.cdiv(N_a, tn) < 2 and M_a >= 2 * m_align:
        tm = _round_up(pl.cdiv(M_a, 2), m_align)

    K_full = _round_up(Kc, 128)

    def est_vmem(tk_, ktiled):
        b = 2 * tm * tk_ * in_b + 2 * tk_ * tn * in_b + 2 * tm * tn * out_b + 2 * tn * 4
        if ktiled:
            b += tm * tn * 4          # f32 accumulator scratch
        return b

    if (not force_ktiled) and est_vmem(K_full, False) <= _VMEM_BUDGET:
        use_fullk, tk = True, K_full
    else:
        use_fullk = False
        tk = min(K_full, _round_up(tk_max, 128))
        while tk > 128 and est_vmem(tk, True) > _VMEM_BUDGET:
            tk = _round_up(tk // 2, 128)

    M_pad = _round_up(M, tm)
    N_pad = _round_up(C_out, tn)
    K_pad = _round_up(Kc, tk)

    # Zero-padding is numerically free for the dot; padded rows/cols sliced off.
    x_col = jnp.pad(x_col, ((0, M_pad - M), (0, K_pad - Kc)))
    w2 = jnp.pad(w2, ((0, K_pad - Kc), (0, N_pad - C_out)))
    b2 = jnp.pad(bias.astype(jnp.float32), (0, N_pad - C_out)).reshape(1, N_pad)

    grid_m = M_pad // tm
    grid_n = N_pad // tn
    vmem_limit = int(min(_VMEM_LIMIT_CAP,
                         max(32 * 1024 * 1024,
                             est_vmem(tk, not use_fullk) * 5 // 4)))

    if use_fullk:
        # Choose grid order minimizing HBM re-streaming:
        #   i-outer: X streamed once, W re-streamed grid_m times.
        #   j-outer: W streamed once, X re-streamed grid_n times.
        x_bytes = M_pad * K_pad * in_b
        w_bytes = K_pad * N_pad * in_b
        if grid_n * x_bytes + w_bytes <= x_bytes + grid_m * w_bytes:
            grid = (grid_n, grid_m)
            x_map = lambda j, i: (i, 0)
            w_map = lambda j, i: (0, j)
            b_map = lambda j, i: (0, j)
            o_map = lambda j, i: (i, j)
        else:
            grid = (grid_m, grid_n)
            x_map = lambda i, j: (i, 0)
            w_map = lambda i, j: (0, j)
            b_map = lambda i, j: (0, j)
            o_map = lambda i, j: (i, j)

        out_pad = pl.pallas_call(
            _matmul_bias_fullk_kernel,
            out_shape=jax.ShapeDtypeStruct((M_pad, N_pad), out_dtype),
            grid_spec=pltpu.PrefetchScalarGridSpec(
                num_scalar_prefetch=0,
                grid=grid,
                in_specs=[
                    pl.BlockSpec((tm, K_pad), x_map),     # X_col tile, full K resident
                    pl.BlockSpec((K_pad, tn), w_map),     # W2 tile (lane-dense C_out)
                    pl.BlockSpec((1, tn), b_map),         # bias tile
                ],
                out_specs=pl.BlockSpec((tm, tn), o_map),
            ),
            compiler_params=pltpu.CompilerParams(
                dimension_semantics=("parallel", "parallel"),
                vmem_limit_bytes=vmem_limit,
            ),
        )(x_col, w2, b2)
    else:
        grid = (grid_m, grid_n, K_pad // tk)
        out_pad = pl.pallas_call(
            _matmul_bias_ktiled_kernel,
            out_shape=jax.ShapeDtypeStruct((M_pad, N_pad), out_dtype),
            grid_spec=pltpu.PrefetchScalarGridSpec(
                num_scalar_prefetch=0,
                grid=grid,
                in_specs=[
                    pl.BlockSpec((tm, tk), lambda i, j, k: (i, k)),
                    pl.BlockSpec((tk, tn), lambda i, j, k: (k, j)),
                    pl.BlockSpec((1, tn), lambda i, j, k: (0, j)),
                ],
                out_specs=pl.BlockSpec((tm, tn), lambda i, j, k: (i, j)),
                scratch_shapes=[pltpu.VMEM((tm, tn), jnp.float32)],
            ),
            compiler_params=pltpu.CompilerParams(
                dimension_semantics=("parallel", "parallel", "arbitrary"),
                vmem_limit_bytes=vmem_limit,
            ),
        )(x_col, w2, b2)

    out = out_pad[:M, :C_out].reshape(N, L_out, C_out)
    return jnp.transpose(out, (0, 2, 1))                                # [N, C_out, L_out]


def init_conv1d_norm_params(key, in_channels, out_channels, kernel_size, w_init_gain="linear"):
    """xavier_uniform weight (torch calculate_gain) + default torch Conv1d bias init."""
    gains = {"linear": 1.0, "relu": 2.0 ** 0.5, "tanh": 5.0 / 3.0, "sigmoid": 1.0}
    gain = gains[w_init_gain]
    kw_key, kb_key = jax.random.split(key)
    fan_in = in_channels * kernel_size
    fan_out = out_channels * kernel_size
    a = gain * (6.0 / (fan_in + fan_out)) ** 0.5
    weight = jax.random.uniform(
        kw_key, (out_channels, in_channels, kernel_size), jnp.float32, -a, a)
    bound = 1.0 / (fan_in ** 0.5)
    bias = jax.random.uniform(kb_key, (out_channels,), jnp.float32, -bound, bound)
    return weight, bias


if __name__ == "__main__":
    key = jax.random.PRNGKey(0)
    k_x, k_p = jax.random.split(key)

    # Small shapes consistent with the module: [N, C_in, L] -> [N, C_out, L]
    batch, in_ch, out_ch, seq, kw = 2, 32, 64, 16, 5
    stride, dilation = 1, 1
    padding = dilation * (kw - 1) // 2

    x = jax.random.normal(k_x, (batch, in_ch, seq), jnp.float32)
    weight, bias = init_conv1d_norm_params(k_p, in_ch, out_ch, kw, w_init_gain="linear")

    # Default path: bf16 MXU inputs, f32 accumulation, resident-W single-shot GEMM.
    out_bf16 = conv1d_norm_pallas(x, weight, bias, stride=stride, padding=padding,
                                  dilation=dilation)
    out_bf16 = jax.block_until_ready(out_bf16)

    # Also exercise the K-tiled fallback kernel (same math, different structure).
    out_bf16_kt = conv1d_norm_pallas(x, weight, bias, stride=stride, padding=padding,
                                     dilation=dilation, force_ktiled=True)
    out_bf16_kt = jax.block_until_ready(out_bf16_kt)

    # f32 path for a tight numerical check against XLA's f32 conv.
    out_f32 = conv1d_norm_pallas(x, weight, bias, stride=stride, padding=padding,
                                 dilation=dilation, compute_dtype=None)
    out_f32 = jax.block_until_ready(out_f32)

    ref_f32 = jax.lax.conv_general_dilated(
        x, weight,
        window_strides=(stride,), padding=[(padding, padding)],
        rhs_dilation=(dilation,), dimension_numbers=("NCH", "OIH", "NCH"),
    ) + bias[None, :, None]

    ref_bf16 = jax.lax.conv_general_dilated(
        x.astype(jnp.bfloat16), weight.astype(jnp.bfloat16),
        window_strides=(stride,), padding=[(padding, padding)],
        rhs_dilation=(dilation,), dimension_numbers=("NCH", "OIH", "NCH"),
        preferred_element_type=jnp.float32,
    ) + bias[None, :, None]

    assert out_bf16.shape == (batch, out_ch, seq)
    assert out_f32.shape == (batch, out_ch, seq)
    assert jnp.allclose(out_f32, ref_f32, atol=1e-5, rtol=1e-5)
    assert jnp.allclose(out_bf16, ref_bf16, atol=2e-3, rtol=2e-3)
    assert jnp.allclose(out_bf16_kt, ref_bf16, atol=2e-3, rtol=2e-3)

    print("KERNEL_OK")
</pallas_src>

<mosaic_0001>
module attributes {stable_mosaic.version = 11 : i64} {
  func.func @_matmul_bias_fullk_kernel(%arg0: i32, %arg1: i32, %arg2: memref<16x256xbf16, #tpu.memory_space<vmem>>, %arg3: memref<256x128xbf16, #tpu.memory_space<vmem>>, %arg4: memref<1x128xf32, #tpu.memory_space<vmem>>, %arg5: memref<16x128xf32, #tpu.memory_space<vmem>>) attributes {dimension_semantics = [#tpu.dimension_semantics<parallel>, #tpu.dimension_semantics<parallel>], iteration_bounds = array<i64: 1, 2>, scalar_prefetch = 0 : i64, scratch_operands = 0 : i64, tpu.core_type = #tpu.core_type<tc>, window_params = [{transform_indices = @transform_0, window_bounds = array<i64: 16, 256>}, {transform_indices = @transform_1, window_bounds = array<i64: 256, 128>}, {transform_indices = @transform_2, window_bounds = array<i64: 1, 128>}, {transform_indices = @transform_3, window_bounds = array<i64: 16, 128>}]} {
    %c0 = arith.constant 0 : index
    %c0_0 = arith.constant 0 : index
    %0 = vector.load %arg2[%c0, %c0_0] : memref<16x256xbf16, #tpu.memory_space<vmem>>, vector<16x256xbf16>
    %c0_1 = arith.constant 0 : index
    %c0_2 = arith.constant 0 : index
    %1 = vector.load %arg3[%c0_1, %c0_2] : memref<256x128xbf16, #tpu.memory_space<vmem>>, vector<256x128xbf16>
    %cst = arith.constant dense<0.000000e+00> : vector<16x128xf32>
    %2 = tpu.matmul %0, %1, %cst {dimension_numbers = #tpu.dot_dimension_numbers<[1], [0], [0], [1], [0, 0, 1, 1], [], []>} : vector<16x256xbf16>, vector<256x128xbf16>, vector<16x128xf32> -> vector<16x128xf32>
    %c0_3 = arith.constant 0 : index
    %c0_4 = arith.constant 0 : index
    %3 = vector.load %arg4[%c0_3, %c0_4] : memref<1x128xf32, #tpu.memory_space<vmem>>, vector<1x128xf32>
    %4 = vector.broadcast %3 : vector<1x128xf32> to vector<16x128xf32>
    %5 = arith.addf %2, %4 : vector<16x128xf32>
    %c0_5 = arith.constant 0 : index
    %c0_6 = arith.constant 0 : index
    %6 = vector.load %arg5[%c0_5, %c0_6] : memref<16x128xf32, #tpu.memory_space<vmem>>, vector<16x128xf32>
    tpu.vector_store %arg5[%c0_5, %c0_6], %5 {strides = array<i32>} : memref<16x128xf32, #tpu.memory_space<vmem>>, vector<16x128xf32>,
    return
  }
  func.func @transform_0(%arg0: i32, %arg1: i32) -> (i32, i32) {
    %c0_i32 = arith.constant 0 : i32
    %c0_i32_0 = arith.constant 0 : i32
    return %arg1, %c0_i32 : i32, i32
  }
  func.func @transform_1(%arg0: i32, %arg1: i32) -> (i32, i32) {
    %c0_i32 = arith.constant 0 : i32
    %c0_i32_0 = arith.constant 0 : i32
    return %c0_i32, %arg0 : i32, i32
  }
  func.func @transform_2(%arg0: i32, %arg1: i32) -> (i32, i32) {
    %c0_i32 = arith.constant 0 : i32
    %c0_i32_0 = arith.constant 0 : i32
    return %c0_i32, %arg0 : i32, i32
  }
  func.func @transform_3(%arg0: i32, %arg1: i32) -> (i32, i32) {
    %c0_i32 = arith.constant 0 : i32
    return %arg1, %arg0 : i32, i32
  }
}

</mosaic_0001>

<bundles_post_ra>
// kernel: tpu_custom_call.1
= control target key start
LH: loop header
LB: loop body
LE: loop exit
PB: predicated region body
PF: predicated region fallthrough
CT: control target
= control target key end

     0   :  { %8 = vsyncpa [#allocation3], 0  ;;  %s1121_s0 = inlined_call_operand.hbm [shape: bf16[32,256], index: 0, kind: input, shape index: {}]   ;;  %s1122_s1 = inlined_call_operand.hbm [shape: bf16[256,128], index: 1, kind: input, shape index: {}]   ;;  %s1123_s2 = inlined_call_operand.vmem [shape: f32[1,128], index: 2, kind: input, shape index: {}]   ;;  %s1124_s3 = inlined_call_operand.hbm [shape: f32[32,128], index: 3, kind: output, shape index: {}]  }
   0x1   :  { %10 = vsyncpa [#allocation3 + $0x1], 0 }
   0x2   :  { %11 = vsyncpa [#allocation6], 0 }
   0x3   :  { %12 = vsyncpa [#allocation4], 0 }
   0x4   :  { %14 = vsyncpa [#allocation4 + $0x1], 0  ;;  %s891_s12 = smov 0   ;;  %s893_s13 = smov 0  }
   0x5   :  { %s895_s14 = smov 0   ;;  %s897_s15 = smov 0  }
   0x6   :  { %s899_s16 = smov 0   ;;  %s901_s17 = smov 0  }
   0x7 LB: > { %s555_s18 = sadd.s32 4294967295, %s860_s17   ;;  %s556_s19 = sadd.s32 4294967294, %s860_s17   ;;  %s860_s17 = sphi %s901_s17, %s20_s17   ;;  %s856_s16 = sphi %s899_s16, %s1148_s16   ;;  %s852_s15 = sphi %s897_s15, %s1147_s15   ;;  %s848_s14 = sphi %s895_s14, %s1146_s14   ;;  %s844_s13 = sphi %s893_s13, %s1145_s13   ;;  %s840_s12 = sphi %s891_s12, %s1144_s12  }
   0x8   : > { %p52_p0 = scmp.ne.s32.totalorder %s844_s13, %s840_s12  ;;  %p925_p1 = scmp.eq.s32.totalorder %s555_s18, 0 }
   0x9   : > { %p929_p2 = scmp.eq.s32.totalorder %s555_s18, 1  ;;  %p136_p3 = scmp.eq.s32.totalorder %s556_s19, 1 }
   0xa   : > { %s1129_s20 = scalar_select %p925_p1, 1, 0 }
   0xb   : > { %s1130_s21 = scalar_select %p929_p2, 1, 0 }
   0xc   : > { %p935_p4 = por %p925_p1, %p52_p0  ;;  %p557_p5 = scmp.ge.s32.totalorder %s860_s17, 1 }
   0xd   : > { %p940_p6 = por %p136_p3, %p52_p0  ;;  %p143_p7 = scmp.lt.s32.totalorder %s860_s17, 3 }
   0xe   : > { %s1131_s22 = scalar_select %p935_p4, 1, 0 }
   0xf   : > { %s1132_s23 = scalar_select %p940_p6, 1, 0 }
  0x10   : > { %p945_p8 = pnand %p557_p5, %p143_p7  ;;  %s862_s25 = smov [#allocation5]  }
  0x11   : > { %s157_s26 = sshll.u32 %s862_s25, 4  ;;  %s29_s28 = sadd.s32 1, %s856_s16  ;;  %s158_s26 = int_to_ptr.vmem [resolvable:$true] %s157_s26 }
  0x12   : > { %s1133_s24 = scalar_select %p945_p8, 1, 0 }
  0x13   : > { %p626_p9 = pneg %p945_p8  ;;  %s716_s4 = scalar_lea.hbm %s1122_s1, 2048 }
  0x14   : > { %p717_p12 = scmp.ne.s32.totalorder %s1122_s1, %s716_s4  ;;  %p723_p5 = scmp.lt.u32.totalorder %s716_s4, %s1122_s1 }
  0x15   : > { %p954_p11 = pnand %p626_p9, %p925_p1 }
  0x17   : > { %p718_p13 = pneg %p954_p11 }
  0x19   : > { %p719_p0 = pnand %p718_p13, %p717_p12 }
  0x1b   : > { %p720_p3 = pneg %p719_p0 }
  0x1d   : > { %p725_p7 = pnand %p723_p5, %p720_p3 }
  0x1f   : > { %728 = shalt.err (!%p725_p7)
}
  0x20   : > { %s729_s9 = scalar_lea.vmem %s158_s26, 2048  ;;  %p737_p1 = scmp.lt.s32.totalorder %s158_s26, %s158_s26 }
  0x21   : > { %p730_p9 = scmp.ne.s32.totalorder %s158_s26, %s729_s9  ;;  %p738_p4 = scmp.lt.s32.totalorder %s729_s9, %s729_s9 }
  0x23   : > { %p732_p10 = pnand %p730_p9, %p718_p13  ;;  %p739_p8 = por %p738_p4, %p737_p1 }
  0x25   : > { %p733_p6 = pneg %p732_p10 }
  0x27   : > { %p740_p2 = pnand %p739_p8, %p733_p6 }
  0x29   : > { %743 = shalt.err (!%p740_p2)
}
  0x2a   : > { %s863_s10 = smov 64   ;;  %s864_s11 = smov 4  }
  0x2b   : > { %629 = dma.hbm_to_vmem [thread:$0]  (!%p954_p11), %s1122_s1, 2048, %s158_s26, [#allocation6], %s863_s10, %s863_s10, %s864_s11  }
  0x2c   : > { %p30_p1 = scmp.ge.s32.totalorder %s29_s28, 2  ;;  %s39_s25 = sadd.s32 1, %s848_s14 }
  0x2d   : > { %p46_p2 = scmp.ne.s32.totalorder %s848_s14, %s844_s13  ;;  %p47_p4 = scmp.eq.s32.totalorder %s860_s17, 0 }
  0x2e   : > { %s1150_s28 = smov (%p30_p1, %s29_s28), 0  ;;  %p1136_p8 = scmp.ne.s32.totalorder %s1130_s21, 0 }
  0x2f   : > { %p981_p6 = por %p47_p4, %p46_p2  ;;  %s36_s27 = ssub.s32 %s856_s16, %s1150_s28 }
  0x30   : > { %p987_p10 = por %p1136_p8, %p46_p2  ;;  %p639_p12 = scmp.lt.s32.totalorder %s860_s17, 2 }
  0x31   : > { %p37_p11 = scmp.eq.s32.totalorder %s36_s27, 0  ;;  %s177_s26 = sand.u32 1, %s848_s14  }
  0x32   : > { %s561_s4 = sshll.u32 %s177_s26, 4  ;;  %s594_s6 = sshll.u32 %s856_s16, 8 }
  0x33   : > { %s996_s5 = scalar_select %p37_p11, %s848_s14, %s39_s25  }
  0x34   : > { %s1002_s9 = scalar_lea.hbm %s1121_s0, %s594_s6  ;;  %s181_s21 = scalar_lea.vmem [#allocation2], %s561_s4 }
  0x35   : > { %s189_s10 = sshll.u32 %s181_s21, 4  ;;  %p1008_p13 = pnand %p639_p12, %p981_p6  ;;  %s1004_s10 = int_to_ptr.vmem [resolvable:$true] %s189_s10 }
  0x36   : > { %s1012_s18 = scalar_lea.sflag [#allocation3], %s177_s26  ;;  %s744_s19 = scalar_lea.hbm %s1002_s9, 256 }
  0x37   : > { %p745_p0 = scmp.ne.s32.totalorder %s1002_s9, %s744_s19  ;;  %p746_p3 = pneg %p1008_p13 }
  0x38   : > { %s749_s29 = scalar_lea.hbm %s1121_s0, 512  ;;  %p750_p9 = scmp.lt.u32.totalorder %s1002_s9, %s1121_s0 }
  0x39   : > { %p747_p5 = pnand %p746_p3, %p745_p0  ;;  %p751_p1 = scmp.lt.u32.totalorder %s749_s29, %s744_s19 }
  0x3a   : > { %p753_p4 = scmp.lt.u32.totalorder %s744_s19, %s1002_s9 }
  0x3b   : > { %p748_p7 = pneg %p747_p5  ;;  %p752_p2 = por %p751_p1, %p750_p9 }
  0x3d   : > { %p754_p6 = por %p753_p4, %p752_p2 }
  0x3f   : > { %p755_p8 = pnand %p754_p6, %p748_p7 }
  0x41   : > { %758 = shalt.err (!%p755_p8)
}
  0x42   : > { %s759_s26 = scalar_lea.vmem %s1004_s10, 256  ;;  %s865_s7 = smov [#allocation2]  }
  0x43   : > { %p760_p12 = scmp.ne.s32.totalorder %s1004_s10, %s759_s26  ;;  %s764_s8 = sshll.u32 %s865_s7, 4  ;;  %s765_s8 = int_to_ptr.vmem [resolvable:$false] %s764_s8 }
  0x44   : > { %s766_s21 = scalar_lea.vmem %s765_s8, 512  ;;  %p767_p5 = scmp.lt.s32.totalorder %s1004_s10, %s765_s8 }
  0x45   : > { %p762_p11 = pnand %p760_p12, %p746_p3  ;;  %p768_p9 = scmp.lt.s32.totalorder %s766_s21, %s759_s26 }
  0x47   : > { %p763_p0 = pneg %p762_p11  ;;  %p769_p1 = por %p768_p9, %p767_p5 }
  0x49   : > { %p770_p2 = pnand %p769_p1, %p763_p0 }
  0x4b   : > { %773 = shalt.err (!%p770_p2)
}
  0x4c   : > { %s866_s19 = smov 128   ;;  %s867_s25 = smov 8  }
  0x4d   : > { %633 = dma.hbm_to_vmem [thread:$0]  (!%p1008_p13), %s1002_s9, 256, %s1004_s10, %s1012_s18, %s866_s19, %s866_s19, %s867_s25  }
  0x4e   : > { %p1139_p3 = scmp.ne.s32.totalorder %s1133_s24, 0 }
  0x4f   : > { %s1043_s27 = sand.u32 (!%p1139_p3), 1, %s844_s13   ;;  %p1140_p7 = scmp.ne.s32.totalorder (!%p1139_p3), %s1131_s22, 0 }
  0x50   : > { %201 = sbr.rel (%p1139_p3) target bundleno = 358 (0x166), region = 32  ;;  %s566_s29 = sshll.u32 (!%p1139_p3), %s1043_s27, 4 }
  0x51   : > { %s204_s4 = scalar_lea.sflag (!%p1139_p3), [#allocation3], %s1043_s27  ;;  %s1049_s6 = scalar_lea.vmem (!%p1139_p3), [#allocation2], %s566_s29 }
  0x57   : > { %827 = dma.done.wait (%p1140_p7), %s204_s4, 256  }
  0x58   : > { %829 = vsyncadd (%p1140_p7), %s204_s4, 4294967040  ;;  %p1141_p13 = scmp.ne.s32.totalorder %s1129_s20, 0 }
  0x5a   : > { %831 = dma.done.wait (%p1141_p13), [#allocation6], 2048  }
  0x5b   : > { %833 = vsyncadd (%p1141_p13), [#allocation6], 4294965248  ;;  %v697_v0 = vld [vmem:[#allocation5 + $0x40] sm:$0xff]   ;;  %v699_v2 = vld [vmem:[#allocation5 + $0x48] sm:$0xff]   ;;  %s236_s24 = scalar_lea.vmem [#allocation7], %s566_s29  ;;  %s595_s10 = sshll.u32 %s852_s15, 8 }
  0x5c   : > { %v698_v1 = vld [vmem:[#allocation5] sm:$0xff]   ;;  %596 = vmatprep.subr.bf16.mxu0 %v697_v0  ;;  %v700_v3 = vld [vmem:[#allocation5 + $0x8] sm:$0xff]   ;;  %v701_v4 = vld [vmem:[#allocation5 + $0x50] sm:$0xff]   ;;  %s448_s9 = sshll.u32 %s236_s24, 4  ;;  %s1072_s26 = scalar_lea.hbm %s1124_s3, %s595_s10  ;;  %s1067_s9 = int_to_ptr.vmem [resolvable:$true] %s448_s9 }
  0x5d   : > { %597 = vmatpush3.bf16.msra.mxu0 %v698_v1  ;;  %v702_v5 = vld [vmem:[#allocation5 + $0x10] sm:$0xff]   ;;  %v703_v6 = vld [vmem:[#allocation5 + $0x58] sm:$0xff]   ;;  %v705_v8 = vld [vmem:[#allocation5 + $0x60] sm:$0xff]   ;;  %s434_s7 = scalar_lea.sflag [#allocation4], %s1043_s27  ;;  %s774_s8 = scalar_lea.vmem %s1067_s9, 256 }
  0x5e   : > { %598 = vmatprep.subr.bf16.mxu0 %v699_v2  ;;  %v704_v7 = vld [vmem:[#allocation5 + $0x18] sm:$0xff]   ;;  %v706_v9 = vld [vmem:[#allocation5 + $0x20] sm:$0xff]   ;;  %v707_v10 = vld [vmem:[#allocation5 + $0x68] sm:$0xff]   ;;  %p775_p4 = scmp.ne.s32.totalorder %s1067_s9, %s774_s8  ;;  %s868_s15 = smov [#allocation7]  }
  0x5f   : > { %v715_v11 = vld [vmem:[%s1049_s6 + $0x4] ss:$8 sps:$4 sm:$0xff]   ;;  %v713_v17 = vld [vmem:[%s1049_s6] ss:$8 sps:$4 sm:$0xff]   ;;  %s778_s21 = sshll.u32 %s868_s15, 4  ;;  %s779_s21 = int_to_ptr.vmem [resolvable:$false] %s778_s21 }
  0x60   : > { %v708_v12 = vld [vmem:[#allocation5 + $0x28] sm:$0xff]   ;;  %422 = vmatprep.mubr.bf16.mxu0 %v715_v11  ;;  %v709_v13 = vld [vmem:[#allocation5 + $0x70] sm:$0xff]   ;;  %v711_v15 = vld [vmem:[#allocation5 + $0x78] sm:$0xff]   ;;  %p776_p6 = pnand %p775_p4, %p987_p10  ;;  %s780_s19 = scalar_lea.vmem %s779_s21, 512 }
  0x61   : > { %599 = vmatpush3.bf16.msra.mxu0 %v700_v3  ;;  %v710_v14 = vld [vmem:[#allocation5 + $0x30] sm:$0xff]   ;;  %v712_v16 = vld [vmem:[#allocation5 + $0x38] sm:$0xff]   ;;  %v569_v19 = vld [vmem:[%s1123_s2] ss:$0 sm:$0xff]  ;;  %p781_p12 = scmp.lt.s32.totalorder %s1067_s9, %s779_s21  ;;  %p782_p11 = scmp.lt.s32.totalorder %s780_s19, %s774_s8 }
  0x62   : > { %600 = vmatprep.subr.bf16.mxu0 %v701_v4  ;;  %p777_p8 = pneg %p776_p6 }
  0x63   : > { %p783_p0 = por %p782_p11, %p781_p12 }
  0x65   : > { %601 = vmatpush3.bf16.msra.mxu0 %v702_v5  ;;  %p784_p5 = pnand %p783_p0, %p777_p8 }
  0x66   : > { %602 = vmatprep.subr.bf16.mxu0 %v703_v6 }
  0x69   : > { %603 = vmatpush3.bf16.msra.mxu0 %v704_v7 }
  0x6a   : > { %604 = vmatprep.subr.bf16.mxu0 %v705_v8 }
  0x6d   : > { %605 = vmatpush3.bf16.msra.mxu0 %v706_v9 }
  0x6e   : > { %606 = vmatprep.subr.bf16.mxu0 %v707_v10 }
  0x71   : > { %607 = vmatpush3.bf16.msra.mxu0 %v708_v12 }
  0x72   : > { %608 = vmatprep.subr.bf16.mxu0 %v709_v13 }
  0x75   : > { %609 = vmatpush3.bf16.msra.mxu0 %v710_v14 }
  0x76   : > { %610 = vmatprep.subr.bf16.mxu0 %v711_v15 }
  0x79   : > { %611 = vmatpush3.bf16.msra.mxu0 %v712_v16 }
  0x7c   : > { %423 = vmatmul.mubr.bf16.vlgmr.msra.gmra.mrb[0].mxu0 %v713_v17 }
 0x14f   : > { %v612_v18 = vpop.f32.mrb[0].mxu0 }
 0x150   : > { %v613_v20 = vpop.f32.mrb[1].mxu0 }
 0x151   : > { %v614_v21 = vadd.f32 %v613_v20, %v612_v18  ;;  %v615_v22 = vpop.f32.mrb[2].mxu0 }
 0x152   : > { %v616_v23 = vpop.f32.mrb[3].mxu0 }
 0x153   : > { %v425_v24 = vadd.f32 %v614_v21, %v569_v19  ;;  %v617_v25 = vadd.f32 %v616_v23, %v615_v22 }
 0x155   : > { %431 = vst [vmem:[%s236_s24] sm:$0xff] %v425_v24  ;;  %v428_v26 = vadd.f32 %v617_v25, %v569_v19 }
 0x157   : > { %432 = vst [vmem:[%s236_s24 + $0x8] sm:$0xff] %v428_v26 }
 0x158   : > { %787 = shalt.err (!%p784_p5)
}
 0x159   : > { %s788_s25 = scalar_lea.hbm %s1072_s26, 256  ;;  %s792_s6 = scalar_lea.hbm %s1124_s3, 512 }
 0x15a   : > { %p789_p9 = scmp.ne.s32.totalorder %s1072_s26, %s788_s25  ;;  %p793_p3 = scmp.lt.u32.totalorder %s1072_s26, %s1124_s3 }
 0x15b   : > { %p794_p7 = scmp.lt.u32.totalorder %s792_s6, %s788_s25  ;;  %p796_p4 = scmp.lt.u32.totalorder %s788_s25, %s1072_s26 }
 0x15c   : > { %p790_p1 = pnand %p789_p9, %p987_p10 }
 0x15d   : > { %p795_p13 = por %p794_p7, %p793_p3 }
 0x15e   : > { %p791_p2 = pneg %p790_p1 }
 0x15f   : > { %p797_p6 = por %p796_p4, %p795_p13 }
 0x161   : > { %p798_p8 = pnand %p797_p6, %p791_p2 }
 0x163   : > { %801 = shalt.err (!%p798_p8)
}
 0x164   : > { %s869_s24 = smov 128   ;;  %s870_s10 = smov 8  }
 0x165   : > { %624 = dma.vmem_to_hbm [thread:$0]  (%p987_p10), %s1067_s9, 256, %s1072_s26, %s434_s7, %s869_s24, %s869_s24, %s870_s10  }
 0x166 PF: > { %s463_s11 = sand.u32 1, %s840_s12   ;;  %p1142_p12 = scmp.ne.s32.totalorder %s1132_s23, 0 }
 0x167   : > { %p1143_p11 = scmp.ge.s32.totalorder %s860_s17, 2  ;;  %s464_s18 = scalar_lea.sflag [#allocation4], %s463_s11 }
 0x169   : > { %p635_p0 = pnand %p1143_p11, %p1142_p12 }
 0x16b   : > { %835 = dma.done.wait (!%p635_p0), %s464_s18, 256  }
 0x16c   : > { %837 = vsyncadd (!%p635_p0), %s464_s18, 4294967040  ;;  %s20_s17 = sadd.s32 1, %s860_s17   ;;  %s1144_s12 = smov %s844_s13 }
 0x16d   : > { %p17_p5 = scmp.ge.s32.totalorder %s20_s17, 4   ;;  %s1145_s13 = smov %s848_s14 }
 0x16e   : > { %s1146_s14 = smov %s996_s5  ;;  %s1147_s15 = smov %s856_s16 }
 0x16f   : > { %s1148_s16 = smov %s1150_s28  ;;  %19 = sbr.rel (!%p17_p5) target bundleno = 7 (0x7), region = 85 }
 0x176   :  { %469 = vsyncpa [#allocation3], 1 }
 0x177   :  { %471 = vsyncpa [#allocation3 + $0x1], 1 }
 0x178   :  { %472 = vsyncpa [#allocation6], 1 }
 0x179   :  { %473 = vsyncpa [#allocation4], 1 }
 0x17a   :  { %475 = vsyncpa [#allocation4 + $0x1], 1 }

</bundles_post_ra>
